<compile_context>
chip_gen: v5e
topology: v5e:2x2
jax: 0.10.0
libtpu: 0.0.40
codegen_flags: <defaults>
</compile_context>

<pallas_src>
import functools

import jax
import jax.numpy as jnp
from jax.experimental import pallas as pl
from jax.experimental.pallas import tpu as pltpu


def _conv_bn_relu_kernel(x_ref, w_ref, scale_ref, shift_ref, o_ref, xk_ref):
    """One batch tile per grid step, NCL layout (length on the lane axis).

    x_ref:     (Bt, C_in, L)      unpadded input tile
    w_ref:     (C_out, K*C_in)    conv weight, row o laid out as [k*C_in + c]
    scale_ref: (C_out, 1)         gamma / sqrt(running_var + eps)        (f32)
    shift_ref: (C_out, 1)         beta + scale*(conv_bias - running_mean)(f32)
    o_ref:     (Bt, C_out, L)
    xk_ref:    (Bt, K*C_in, L)    VMEM scratch: im2col slab
    """
    _, c_in, length = x_ref.shape
    k_taps = xk_ref.shape[1] // c_in
    pad = k_taps // 2

    x = x_ref[...]

    # One (1, 1, L) lane iota shared by every tap's edge mask.
    lane = jax.lax.broadcasted_iota(jnp.int32, (1, 1, length), 2)

    # 'Same' padding realized in-register: one lane roll (XLU slot) + edge
    # mask per tap.  Each shifted view is written straight into the im2col
    # scratch slab (consumed immediately -> bounded vreg live ranges, and the
    # slab is accounted for in the tile-size budget via scratch_shapes).
    for k in range(k_taps):
        d = k - pad  # want xs[..., l] = x[..., l + d]  (0 outside [0, L))
        if d == 0:
            xs = x
        else:
            rolled = pltpu.roll(x, (-d) % length, 2)
            valid = jnp.logical_and(lane + d >= 0, lane + d < length)
            xs = jnp.where(valid, rolled, 0)
        xk_ref[:, k * c_in:(k + 1) * c_in, :] = xs

    # One MXU contraction, K*C_in deep, over the whole batch tile (im2col):
    # replaces Bt*K small C_in-deep matmuls + the per-batch accumulator adds.
    # TODO(synk): for tiny C_in/C_out (MXU array utilization ~%) a VPU
    # broadcast-MAC path over K*C_in would be faster; not implemented.
    acc = jnp.einsum("ok,bkl->bol", w_ref[...], xk_ref[...],
                     preferred_element_type=jnp.float32)  # (Bt, C_out, L) f32

    # Folded eval-mode BatchNorm affine + ReLU (Dropout eval == identity),
    # one lane-dense store for the whole tile.
    y = acc * scale_ref[...][None] + shift_ref[...][None]
    o_ref[...] = jnp.maximum(y, 0.0).astype(o_ref.dtype)


@functools.lru_cache(maxsize=None)
def _vmem_physical_bytes():
    """Per-core VMEM capacity; conservative fallback (v7x: 64 MiB/TC) if the
    trace-time query is unavailable."""
    try:
        info = pltpu.get_tpu_info()
        cap = getattr(info, "vmem_capacity_bytes", None)
        if cap:
            return int(cap)
    except Exception:
        pass
    return 64 << 20


def _pick_batch_tile(n, c_in, c_out, length, k, itemsize, vmem_budget_bytes):
    """Largest batch tile whose per-step working set fits the budget:
    double-buffered input + output blocks, the K*C_in im2col scratch slab,
    and the f32 accumulator.  Keeps >=4 grid steps (>=2 per v7x TensorCore)
    when the batch allows; never forces divisibility (partial last block is
    handled by the grid) so awkward batch sizes don't collapse to bt=1."""
    per_batch = ((2 * c_in + 2 * c_out + k * c_in) * itemsize
                 + 4 * c_out) * length
    bt = max(1, int(vmem_budget_bytes // max(per_batch, 1)))
    if n >= 4:
        bt = min(bt, n // 4)
    elif n >= 2:
        bt = min(bt, n // 2)
    return max(1, min(bt, n))


@functools.partial(
    jax.jit, static_argnames=("kernel_size", "bt", "vmem_limit_bytes"))
def _forward_impl(x_ncl, weight, bias, gamma, beta, running_mean, running_var,
                  *, kernel_size, bt, vmem_limit_bytes, eps):
    n, c_in, length = x_ncl.shape
    c_out = weight.shape[0]
    k = kernel_size

    # (C_out, C_in, K) -> (C_out, K*C_in) with [o, k*C_in + c] = w[o, c, k];
    # parameter-sized, so this transpose/reshape is negligible.  Kept in the
    # activation dtype so bf16 callers get bf16 MXU operands (f32 acc).
    w2 = jnp.transpose(weight, (0, 2, 1)).reshape(c_out, k * c_in)
    w2 = w2.astype(x_ncl.dtype)

    # Fold eval-mode BatchNorm and the conv bias into per-channel scale/shift.
    scale = (gamma / jnp.sqrt(running_var + eps)).astype(jnp.float32)
    shift = (beta + scale * (bias - running_mean)).astype(jnp.float32)
    scale2 = scale.reshape(c_out, 1)
    shift2 = shift.reshape(c_out, 1)

    grid = (pl.cdiv(n, bt),)

    # TODO(synk): for very long sequences, additionally tile L with a (K-1)
    # halo via the index_map instead of loading the full length per step.
    return pl.pallas_call(
        _conv_bn_relu_kernel,
        out_shape=jax.ShapeDtypeStruct((n, c_out, length), x_ncl.dtype),
        grid_spec=pltpu.PrefetchScalarGridSpec(
            num_scalar_prefetch=0,
            grid=grid,
            in_specs=[
                pl.BlockSpec((bt, c_in, length), lambda i: (i, 0, 0)),
                pl.BlockSpec((c_out, k * c_in), lambda i: (0, 0)),
                pl.BlockSpec((c_out, 1), lambda i: (0, 0)),
                pl.BlockSpec((c_out, 1), lambda i: (0, 0)),
            ],
            out_specs=pl.BlockSpec((bt, c_out, length), lambda i: (i, 0, 0)),
            scratch_shapes=[
                pltpu.VMEM((bt, k * c_in, length), x_ncl.dtype),
            ],
        ),
        compiler_params=pltpu.CompilerParams(
            dimension_semantics=("parallel",),
            vmem_limit_bytes=vmem_limit_bytes,
        ),
    )(x_ncl, w2, scale2, shift2)


def conv1d_bn_relu_dropout_forward(x_ncl, weight, bias, gamma, beta,
                                   running_mean, running_var, *,
                                   kernel_size, eps=1e-5):
    """Forward pass (inference mode).

    x_ncl:  (N, C_in, L)       -- PyTorch layout, kept as-is (no transposes)
    weight: (C_out, C_in, K)   -- PyTorch Conv1d weight layout
    bias, gamma, beta, running_mean, running_var: (C_out,)
    returns (N, C_out, L) in PyTorch layout.
    """
    n, c_in, length = x_ncl.shape
    c_out = weight.shape[0]
    if kernel_size % 2 == 0:
        # TODO(synk): even kernel sizes (PyTorch padding=K//2 grows the output
        # by 1) are not supported by this kernel path.
        raise NotImplementedError("only odd kernel_size is supported")

    phys = _vmem_physical_bytes()
    # Per-step working-set budget ~= half of the physical VMEM of the part we
    # are actually on (v5e/v6e: 128 MiB, v7x: 64 MiB/TC); scoped VMEM limit
    # raised toward the physical size so the budget is usable.
    budget = max(phys // 2, 8 << 20)
    vmem_limit = int(min(max(phys * 0.85, 32 << 20), 128 << 20))

    bt = _pick_batch_tile(n, c_in, c_out, length, kernel_size,
                          jnp.dtype(x_ncl.dtype).itemsize, budget)

    return _forward_impl(
        x_ncl, weight, bias, gamma, beta, running_mean, running_var,
        kernel_size=kernel_size, bt=bt, vmem_limit_bytes=vmem_limit, eps=eps)


def _reference(x_ncl, weight, bias, gamma, beta, running_mean, running_var,
               kernel_size, eps=1e-5):
    """Pure-JAX reference (lax conv) for correctness checking."""
    pad = kernel_size // 2
    conv = jax.lax.conv_general_dilated(
        x_ncl.astype(jnp.float32),
        weight.astype(jnp.float32),
        window_strides=(1,),
        padding=[(pad, pad)],
        dimension_numbers=("NCH", "OIH", "NCH"),
    ) + bias[None, :, None]
    scale = gamma / jnp.sqrt(running_var + eps)
    shift = beta - running_mean * scale
    bn = conv * scale[None, :, None] + shift[None, :, None]
    return jnp.maximum(bn, 0.0)


if __name__ == "__main__":
    # Module config: Conv1D_BatchNorm_Relu_Dropout(hidden_dims=8,
    # kernel_size=5, drop_probability=0.5) -- dropout is identity in eval.
    N, C_IN, L = 2, 4, 16
    C_OUT, K = 8, 5

    key = jax.random.PRNGKey(0)
    kx, kw, kb, kg, kbe, km, kv = jax.random.split(key, 7)

    x = jax.random.normal(kx, (N, C_IN, L), dtype=jnp.float32)

    weight = jax.random.normal(kw, (C_OUT, C_IN, K), dtype=jnp.float32) * 0.1
    bias = jax.random.normal(kb, (C_OUT,), dtype=jnp.float32) * 0.1
    gamma = 1.0 + 0.1 * jax.random.normal(kg, (C_OUT,), dtype=jnp.float32)
    beta = 0.1 * jax.random.normal(kbe, (C_OUT,), dtype=jnp.float32)
    running_mean = 0.1 * jax.random.normal(km, (C_OUT,), dtype=jnp.float32)
    running_var = 1.0 + 0.1 * jax.random.uniform(kv, (C_OUT,), dtype=jnp.float32)

    out = conv1d_bn_relu_dropout_forward(
        x, weight, bias, gamma, beta, running_mean, running_var,
        kernel_size=K,
    )
    out = jax.block_until_ready(out)

    ref = _reference(x, weight, bias, gamma, beta, running_mean, running_var, K)
    assert out.shape == (N, C_OUT, L), out.shape
    assert jnp.allclose(out, ref, rtol=1e-4, atol=1e-4), (
        float(jnp.max(jnp.abs(out - ref)))
    )

    print("KERNEL_OK")
</pallas_src>

<mosaic_0001>
module attributes {stable_mosaic.version = 11 : i64} {
  func.func @_conv_bn_relu_kernel(%arg0: i32, %arg1: memref<1x4x16xf32, #tpu.memory_space<vmem>>, %arg2: memref<8x20xf32, #tpu.memory_space<vmem>>, %arg3: memref<8x1xf32, #tpu.memory_space<vmem>>, %arg4: memref<8x1xf32, #tpu.memory_space<vmem>>, %arg5: memref<1x8x16xf32, #tpu.memory_space<vmem>>, %arg6: memref<1x20x16xf32, #tpu.memory_space<vmem>>) attributes {dimension_semantics = [#tpu.dimension_semantics<parallel>], iteration_bounds = array<i64: 2>, scalar_prefetch = 0 : i64, scratch_operands = 1 : i64, tpu.core_type = #tpu.core_type<tc>, window_params = [{transform_indices = @transform_0, window_bounds = array<i64: 1, 4, 16>}, {pipeline_mode = #tpu.pipeline_mode<synchronous>, transform_indices = @transform_1, window_bounds = array<i64: 8, 20>}, {pipeline_mode = #tpu.pipeline_mode<synchronous>, transform_indices = @transform_2, window_bounds = array<i64: 8, 1>}, {pipeline_mode = #tpu.pipeline_mode<synchronous>, transform_indices = @transform_3, window_bounds = array<i64: 8, 1>}, {transform_indices = @transform_4, window_bounds = array<i64: 1, 8, 16>}]} {
    %c0 = arith.constant 0 : index
    %c0_0 = arith.constant 0 : index
    %c0_1 = arith.constant 0 : index
    %0 = vector.load %arg1[%c0, %c0_0, %c0_1] : memref<1x4x16xf32, #tpu.memory_space<vmem>>, vector<1x4x16xf32>
    %1 = tpu.iota {dimensions = array<i32: 2>} : vector<1x1x16xi32>
    %c2_i32 = arith.constant 2 : i32
    %2 = tpu.dynamic_rotate %0 by %c2_i32 dim 2 : vector<1x4x16xf32>, i32 -> vector<1x4x16xf32>
    %c-2_i32 = arith.constant -2 : i32
    %3 = vector.broadcast %c-2_i32 : i32 to vector<1x1x16xi32>
    %4 = arith.addi %1, %3 : vector<1x1x16xi32>
    %c0_i32 = arith.constant 0 : i32
    %5 = vector.broadcast %c0_i32 : i32 to vector<1x1x16xi32>
    %6 = arith.cmpi sge, %4, %5 : vector<1x1x16xi32>
    %c-2_i32_2 = arith.constant -2 : i32
    %7 = vector.broadcast %c-2_i32_2 : i32 to vector<1x1x16xi32>
    %8 = arith.addi %1, %7 : vector<1x1x16xi32>
    %c16_i32 = arith.constant 16 : i32
    %9 = vector.broadcast %c16_i32 : i32 to vector<1x1x16xi32>
    %10 = arith.cmpi slt, %8, %9 : vector<1x1x16xi32>
    %11 = arith.andi %6, %10 : vector<1x1x16xi1>
    %c0_i32_3 = arith.constant 0 : i32
    %12 = arith.sitofp %c0_i32_3 : i32 to f32
    %13 = vector.shape_cast %11 : vector<1x1x16xi1> to vector<1x1x16xi1>
    %14 = vector.broadcast %13 : vector<1x1x16xi1> to vector<1x4x16xi1>
    %15 = vector.broadcast %12 : f32 to vector<1x4x16xf32>
    %16 = arith.select %14, %2, %15 : vector<1x4x16xi1>, vector<1x4x16xf32>
    %c0_4 = arith.constant 0 : index
    %c0_5 = arith.constant 0 : index
    %c0_6 = arith.constant 0 : index
    %17 = vector.load %arg6[%c0_4, %c0_5, %c0_6] : memref<1x20x16xf32, #tpu.memory_space<vmem>>, vector<1x4x16xf32>
    tpu.vector_store %arg6[%c0_4, %c0_5, %c0_6], %16 {strides = array<i32>} : memref<1x20x16xf32, #tpu.memory_space<vmem>>, vector<1x4x16xf32>,
    %c1_i32 = arith.constant 1 : i32
    %18 = tpu.dynamic_rotate %0 by %c1_i32 dim 2 : vector<1x4x16xf32>, i32 -> vector<1x4x16xf32>
    %c-1_i32 = arith.constant -1 : i32
    %19 = vector.broadcast %c-1_i32 : i32 to vector<1x1x16xi32>
    %20 = arith.addi %1, %19 : vector<1x1x16xi32>
    %c0_i32_7 = arith.constant 0 : i32
    %21 = vector.broadcast %c0_i32_7 : i32 to vector<1x1x16xi32>
    %22 = arith.cmpi sge, %20, %21 : vector<1x1x16xi32>
    %c-1_i32_8 = arith.constant -1 : i32
    %23 = vector.broadcast %c-1_i32_8 : i32 to vector<1x1x16xi32>
    %24 = arith.addi %1, %23 : vector<1x1x16xi32>
    %c16_i32_9 = arith.constant 16 : i32
    %25 = vector.broadcast %c16_i32_9 : i32 to vector<1x1x16xi32>
    %26 = arith.cmpi slt, %24, %25 : vector<1x1x16xi32>
    %27 = arith.andi %22, %26 : vector<1x1x16xi1>
    %c0_i32_10 = arith.constant 0 : i32
    %28 = arith.sitofp %c0_i32_10 : i32 to f32
    %29 = vector.shape_cast %27 : vector<1x1x16xi1> to vector<1x1x16xi1>
    %30 = vector.broadcast %29 : vector<1x1x16xi1> to vector<1x4x16xi1>
    %31 = vector.broadcast %28 : f32 to vector<1x4x16xf32>
    %32 = arith.select %30, %18, %31 : vector<1x4x16xi1>, vector<1x4x16xf32>
    %c0_11 = arith.constant 0 : index
    %c4 = arith.constant 4 : index
    %c0_12 = arith.constant 0 : index
    %33 = vector.load %arg6[%c0_11, %c4, %c0_12] : memref<1x20x16xf32, #tpu.memory_space<vmem>>, vector<1x4x16xf32>
    tpu.vector_store %arg6[%c0_11, %c4, %c0_12], %32 {strides = array<i32>} : memref<1x20x16xf32, #tpu.memory_space<vmem>>, vector<1x4x16xf32>,
    %c0_13 = arith.constant 0 : index
    %c8 = arith.constant 8 : index
    %c0_14 = arith.constant 0 : index
    %34 = vector.load %arg6[%c0_13, %c8, %c0_14] : memref<1x20x16xf32, #tpu.memory_space<vmem>>, vector<1x4x16xf32>
    tpu.vector_store %arg6[%c0_13, %c8, %c0_14], %0 {strides = array<i32>} : memref<1x20x16xf32, #tpu.memory_space<vmem>>, vector<1x4x16xf32>,
    %c15_i32 = arith.constant 15 : i32
    %35 = tpu.dynamic_rotate %0 by %c15_i32 dim 2 : vector<1x4x16xf32>, i32 -> vector<1x4x16xf32>
    %c1_i32_15 = arith.constant 1 : i32
    %36 = vector.broadcast %c1_i32_15 : i32 to vector<1x1x16xi32>
    %37 = arith.addi %1, %36 : vector<1x1x16xi32>
    %c0_i32_16 = arith.constant 0 : i32
    %38 = vector.broadcast %c0_i32_16 : i32 to vector<1x1x16xi32>
    %39 = arith.cmpi sge, %37, %38 : vector<1x1x16xi32>
    %c1_i32_17 = arith.constant 1 : i32
    %40 = vector.broadcast %c1_i32_17 : i32 to vector<1x1x16xi32>
    %41 = arith.addi %1, %40 : vector<1x1x16xi32>
    %c16_i32_18 = arith.constant 16 : i32
    %42 = vector.broadcast %c16_i32_18 : i32 to vector<1x1x16xi32>
    %43 = arith.cmpi slt, %41, %42 : vector<1x1x16xi32>
    %44 = arith.andi %39, %43 : vector<1x1x16xi1>
    %c0_i32_19 = arith.constant 0 : i32
    %45 = arith.sitofp %c0_i32_19 : i32 to f32
    %46 = vector.shape_cast %44 : vector<1x1x16xi1> to vector<1x1x16xi1>
    %47 = vector.broadcast %46 : vector<1x1x16xi1> to vector<1x4x16xi1>
    %48 = vector.broadcast %45 : f32 to vector<1x4x16xf32>
    %49 = arith.select %47, %35, %48 : vector<1x4x16xi1>, vector<1x4x16xf32>
    %c0_20 = arith.constant 0 : index
    %c12 = arith.constant 12 : index
    %c0_21 = arith.constant 0 : index
    %50 = vector.load %arg6[%c0_20, %c12, %c0_21] : memref<1x20x16xf32, #tpu.memory_space<vmem>>, vector<1x4x16xf32>
    tpu.vector_store %arg6[%c0_20, %c12, %c0_21], %49 {strides = array<i32>} : memref<1x20x16xf32, #tpu.memory_space<vmem>>, vector<1x4x16xf32>,
    %c14_i32 = arith.constant 14 : i32
    %51 = tpu.dynamic_rotate %0 by %c14_i32 dim 2 : vector<1x4x16xf32>, i32 -> vector<1x4x16xf32>
    %c2_i32_22 = arith.constant 2 : i32
    %52 = vector.broadcast %c2_i32_22 : i32 to vector<1x1x16xi32>
    %53 = arith.addi %1, %52 : vector<1x1x16xi32>
    %c0_i32_23 = arith.constant 0 : i32
    %54 = vector.broadcast %c0_i32_23 : i32 to vector<1x1x16xi32>
    %55 = arith.cmpi sge, %53, %54 : vector<1x1x16xi32>
    %c2_i32_24 = arith.constant 2 : i32
    %56 = vector.broadcast %c2_i32_24 : i32 to vector<1x1x16xi32>
    %57 = arith.addi %1, %56 : vector<1x1x16xi32>
    %c16_i32_25 = arith.constant 16 : i32
    %58 = vector.broadcast %c16_i32_25 : i32 to vector<1x1x16xi32>
    %59 = arith.cmpi slt, %57, %58 : vector<1x1x16xi32>
    %60 = arith.andi %55, %59 : vector<1x1x16xi1>
    %c0_i32_26 = arith.constant 0 : i32
    %61 = arith.sitofp %c0_i32_26 : i32 to f32
    %62 = vector.shape_cast %60 : vector<1x1x16xi1> to vector<1x1x16xi1>
    %63 = vector.broadcast %62 : vector<1x1x16xi1> to vector<1x4x16xi1>
    %64 = vector.broadcast %61 : f32 to vector<1x4x16xf32>
    %65 = arith.select %63, %51, %64 : vector<1x4x16xi1>, vector<1x4x16xf32>
    %c0_27 = arith.constant 0 : index
    %c16 = arith.constant 16 : index
    %c0_28 = arith.constant 0 : index
    %66 = vector.load %arg6[%c0_27, %c16, %c0_28] : memref<1x20x16xf32, #tpu.memory_space<vmem>>, vector<1x4x16xf32>
    tpu.vector_store %arg6[%c0_27, %c16, %c0_28], %65 {strides = array<i32>} : memref<1x20x16xf32, #tpu.memory_space<vmem>>, vector<1x4x16xf32>,
    %c0_29 = arith.constant 0 : index
    %c0_30 = arith.constant 0 : index
    %67 = vector.load %arg2[%c0_29, %c0_30] : memref<8x20xf32, #tpu.memory_space<vmem>>, vector<8x20xf32>
    %c0_31 = arith.constant 0 : index
    %c0_32 = arith.constant 0 : index
    %c0_33 = arith.constant 0 : index
    %68 = vector.load %arg6[%c0_31, %c0_32, %c0_33] : memref<1x20x16xf32, #tpu.memory_space<vmem>>, vector<1x20x16xf32>
    "tpu.trace_start"() <{level = 10 : i32, message = "ok,bkl->bol"}> : () -> ()
    %cst = arith.constant dense<0.000000e+00> : vector<1x16x8xf32>
    %69 = tpu.matmul %68, %67, %cst {dimension_numbers = #tpu.dot_dimension_numbers<[1], [1], [0, 2], [0], [0, 0, 0, 2, 1, 0], [], []>} : vector<1x20x16xf32>, vector<8x20xf32>, vector<1x16x8xf32> -> vector<1x16x8xf32>
    %70 = tpu.transpose %69, [0, 2, 1] : vector<1x16x8xf32> -> vector<1x8x16xf32>
    "tpu.trace_stop"() : () -> ()
    %c0_34 = arith.constant 0 : index
    %c0_35 = arith.constant 0 : index
    %71 = vector.load %arg3[%c0_34, %c0_35] : memref<8x1xf32, #tpu.memory_space<vmem>>, vector<8x1xf32>
    %72 = vector.shape_cast %71 : vector<8x1xf32> to vector<1x8x1xf32>
    %73 = vector.broadcast %72 : vector<1x8x1xf32> to vector<1x8x16xf32>
    %74 = arith.mulf %70, %73 : vector<1x8x16xf32>
    %c0_36 = arith.constant 0 : index
    %c0_37 = arith.constant 0 : index
    %75 = vector.load %arg4[%c0_36, %c0_37] : memref<8x1xf32, #tpu.memory_space<vmem>>, vector<8x1xf32>
    %76 = vector.shape_cast %75 : vector<8x1xf32> to vector<1x8x1xf32>
    %77 = vector.broadcast %76 : vector<1x8x1xf32> to vector<1x8x16xf32>
    %78 = arith.addf %74, %77 : vector<1x8x16xf32>
    %cst_38 = arith.constant 0.000000e+00 : f32
    %79 = vector.broadcast %cst_38 : f32 to vector<1x8x16xf32>
    %80 = arith.maximumf %78, %79 : vector<1x8x16xf32>
    %c0_39 = arith.constant 0 : index
    %c0_40 = arith.constant 0 : index
    %c0_41 = arith.constant 0 : index
    %81 = vector.load %arg5[%c0_39, %c0_40, %c0_41] : memref<1x8x16xf32, #tpu.memory_space<vmem>>, vector<1x8x16xf32>
    tpu.vector_store %arg5[%c0_39, %c0_40, %c0_41], %80 {strides = array<i32>} : memref<1x8x16xf32, #tpu.memory_space<vmem>>, vector<1x8x16xf32>,
    return
  }
  func.func @transform_0(%arg0: i32) -> (i32, i32, i32) {
    %c0_i32 = arith.constant 0 : i32
    %c0_i32_0 = arith.constant 0 : i32
    %c0_i32_1 = arith.constant 0 : i32
    return %arg0, %c0_i32, %c0_i32_0 : i32, i32, i32
  }
  func.func @transform_1(%arg0: i32) -> (i32, i32) {
    %c0_i32 = arith.constant 0 : i32
    %c0_i32_0 = arith.constant 0 : i32
    %c0_i32_1 = arith.constant 0 : i32
    return %c0_i32, %c0_i32_0 : i32, i32
  }
  func.func @transform_2(%arg0: i32) -> (i32, i32) {
    %c0_i32 = arith.constant 0 : i32
    %c0_i32_0 = arith.constant 0 : i32
    %c0_i32_1 = arith.constant 0 : i32
    return %c0_i32, %c0_i32_0 : i32, i32
  }
  func.func @transform_3(%arg0: i32) -> (i32, i32) {
    %c0_i32 = arith.constant 0 : i32
    %c0_i32_0 = arith.constant 0 : i32
    %c0_i32_1 = arith.constant 0 : i32
    return %c0_i32, %c0_i32_0 : i32, i32
  }
  func.func @transform_4(%arg0: i32) -> (i32, i32, i32) {
    %c0_i32 = arith.constant 0 : i32
    %c0_i32_0 = arith.constant 0 : i32
    %c0_i32_1 = arith.constant 0 : i32
    return %arg0, %c0_i32, %c0_i32_0 : i32, i32, i32
  }
}

</mosaic_0001>

<bundles_post_ra>
// kernel: _forward_impl.1
= control target key start
LH: loop header
LB: loop body
LE: loop exit
PB: predicated region body
PF: predicated region fallthrough
CT: control target
= control target key end

     0   :  { %9 = vsyncpa [#allocation4], 0  ;;  %s703_s0 = inlined_call_operand.vmem [shape: f32[2,4,16], index: 0, kind: input, shape index: {}]   ;;  %s704_s1 = inlined_call_operand.vmem [shape: f32[8,20], index: 1, kind: input, shape index: {}]   ;;  %s705_s2 = inlined_call_operand.vmem [shape: f32[8,1], index: 2, kind: input, shape index: {}]   ;;  %s706_s3 = inlined_call_operand.vmem [shape: f32[8,1], index: 3, kind: input, shape index: {}]   ;;  %s707_s4 = inlined_call_operand.hbm [shape: f32[2,8,16], index: 4, kind: output, shape index: {}]  }
   0x1   :  { %11 = vsyncpa [#allocation4 + $0x1], 0  ;;  %s600_s15 = smov 0   ;;  %s602_s16 = smov 0  }
   0x2   :  { %s604_s17 = smov 0   ;;  %s606_s18 = smov 0  }
   0x3 LB: > { %s621_s19 = sadd.s32 4294967295, %s567_s18   ;;  %s443_s20 = sadd.s32 4294967294, %s567_s18   ;;  %s567_s18 = sphi %s606_s18, %s713_s18   ;;  %s563_s17 = sphi %s604_s17, %s712_s17   ;;  %s559_s16 = sphi %s602_s16, %s711_s16   ;;  %s555_s15 = sphi %s600_s15, %s710_s15  }
   0x4   : > { %s625_s21 = sadd.s32 1, %s567_s18   ;;  %s113_s22 = sadd.s32 1, %s563_s17 }
   0x5   : > { %s110_s23 = ssub.s32 %s567_s18, %s625_s21  ;;  %p123_p0 = scmp.ne.s32.totalorder %s563_s17, %s559_s16 }
   0x6   : > { %p111_p1 = scmp.eq.s32.totalorder %s110_s23, 0  ;;  %p124_p2 = scmp.eq.s32.totalorder %s621_s19, 1 }
   0x7   : > { %p129_p3 = scmp.ne.s32.totalorder %s559_s16, %s555_s15  ;;  %p130_p4 = scmp.eq.s32.totalorder %s443_s20, 1 }
   0x8   : > { %s636_s24 = scalar_select %p111_p1, %s563_s17, %s113_s22  }
   0x9   : > { %p638_p5 = por %p124_p2, %p123_p0  ;;  %p642_p6 = por %p130_p4, %p129_p3 }
   0xa   : > { %p446_p7 = scmp.ge.s32.totalorder %s567_s18, 1  ;;  %p164_p8 = scmp.lt.s32.totalorder %s567_s18, 3 }
   0xc   : > { %p165_p9 = pnand %p446_p7, %p164_p8 }
   0xd   : > { %p189_p10 = scmp.lt.s32.totalorder (!%p165_p9), %s621_s19, 1  ;;  %s569_s6 = smov (!%p165_p9), 16  }
   0xe   : > { %168 = sbr.rel (%p165_p9) target bundleno = 853 (0x355), region = 36  ;;  %s570_s7 = smov (!%p165_p9), 127  }
   0xf   : > { %s571_s8 = smov (!%p165_p9), 114   ;;  %s572_s9 = smov (!%p165_p9), 126  }
  0x10   : > { %s573_s10 = smov (!%p165_p9), 113   ;;  %s186_s23 = sand.u32 (!%p165_p9), 1, %s559_s16  }
  0x11   : > { %s525_s13 = scalar_lea.hbm (!%p165_p9), %s707_s4, 16 }
  0x13   : > { %s190_s27 = scalar_select %p189_p10, %s621_s19, 1  ;;  %vm214_vm0 = vcmask 125952   ;;  %vm196_vm1 = vcmask 1047680   ;;  %v194_v5 = vlaneseq  ;;  %v250_v17 = vld [vmem:[%s704_s1] sm:$0xff]  ;;  %vm286_vm7 = vcmask 162816  }
  0x14   : > { %449 = vmatpush.xpose.msk.msra.mxu0 %vm286_vm7, %v250_v17  ;;  %456 = vmatpush.xpose.msk.msra.mxu1 %vm286_vm7, %v250_v17  ;;  %v351_v25 = vld [vmem:[%s705_s2] sm:$0xff]  ;;  %v574_v26 = vmov 0   ;;  %vm366_vm11 = vcmask 130048  }
  0x15   : > { %s448_s28 = sshll.u32 %s190_s27, 2  ;;  %v195_v6 = vand.u32 127, %v194_v5  ;;  %503 = vset.pattern.permute.xlu2 %v574_v26  ;;  %v358_v27 = vld [vmem:[%s706_s3] sm:$0xff]  ;;  %s447_s27 = sshll.u32 %s186_s23, 3 }
  0x16   : > { %s192_s5 = scalar_lea.vmem %s703_s0, %s448_s28  ;;  %s453_s28 = sshll.u32 %s621_s19, 3 }
  0x17   : > { %v193_v0 = vld [vmem:[%s192_s5] sm:$0xf]  ;;  %v228_v7 = vadd.s32 1, %v195_v6  ;;  %v239_v10 = vadd.s32 2, %v195_v6  ;;  %v203_v13 = vadd.s32 4294967294, %v195_v6  ;;  %v216_v14 = vadd.s32 4294967295, %v195_v6  ;;  %s379_s5 = scalar_lea.hbm %s707_s4, %s453_s28 }
  0x18   : > { %197 = vrot.lane.b32.xlu0 %v193_v0, %s569_s6  ;;  %227 = vst.msk [vmem:[#allocation2 + $0x8] sm:$0xf] %vm214_vm0, %v193_v0 }
  0x19   : > { %vm230_vm2 = vcmp.lt.s32.totalorder %v228_v7, 16  ;;  %vm241_vm3 = vcmp.lt.s32.totalorder %v239_v10, 16  ;;  %vm204_vm4 = vcmp.ge.s32.totalorder %v203_v13, 0  ;;  %vm205_vm5 = vcmp.lt.s32.totalorder %v203_v13, 16 }
  0x1a   : > { %vm206_vm6 = vmand %vm204_vm4, %vm205_vm5  ;;  %vm217_vm8 = vcmp.ge.s32.totalorder %v216_v14, 0  ;;  %vm218_vm9 = vcmp.lt.s32.totalorder %v216_v14, 16 }
  0x1b   : > { %vm219_vm10 = vmand %vm217_vm8, %vm218_vm9 }
  0x8a   : > { %v198_v1 = vpop.permute.xlu0 %197 }
  0x8b   : > { %v199_v2 = vsel %vm196_vm1, %v198_v1, %v193_v0 }
  0x8c   : > { %200 = vrot.lane.b32.xlu0 %v199_v2, %s569_s6  ;;  %s188_s6 = scalar_lea.vmem [#allocation3], %s447_s27 }
  0xfe   : > { %v201_v3 = vpop.permute.xlu0 %200 }
  0xff   : > { %v202_v4 = vsel %vm196_vm1, %v201_v3, %v193_v0 }
 0x100   : > { %234 = vrot.lane.b32.xlu2 %v202_v4, %s570_s7  ;;  %210 = vrot.lane.b32.xlu1 %v202_v4, %s571_s8  ;;  %s381_s7 = sshll.u32 %s188_s6, 4  ;;  %s383_s8 = sshll.u32 %s379_s5, 4  ;;  %s382_s7 = int_to_ptr.vmem [resolvable:$true] %s381_s7  ;;  %s384_s8 = int_to_ptr.hbm [resolvable:$true] %s383_s8 }
 0x108   : > { %245 = vrot.lane.b32.xlu2 %v202_v4, %s572_s9  ;;  %222 = vrot.lane.b32.xlu1 %v202_v4, %s573_s10  ;;  %s369_s9 = scalar_lea.sflag [#allocation4], %s186_s23  ;;  %s519_s10 = sshra.s32 %s384_s8, 4  ;;  %s520_s10 = int_to_ptr.hbm [resolvable:$true] %s519_s10 }
 0x109   : > { %s521_s19 = scalar_lea.hbm %s520_s10, 8  ;;  %p526_p0 = scmp.lt.s32.totalorder %s520_s10, %s707_s4 }
 0x10a   : > { %p522_p11 = scmp.ne.s32.totalorder %s520_s10, %s521_s19  ;;  %p527_p1 = scmp.lt.s32.totalorder %s525_s13, %s521_s19 }
 0x10c   : > { %p523_p12 = pnand %p522_p11, %p638_p5  ;;  %p528_p2 = por %p527_p1, %p526_p0 }
 0x10e   : > { %p524_p13 = pneg %p523_p12 }
 0x110   : > { %354 = vperm.xlu2 %503, %v351_v25   ;;  %p529_p3 = pnand %p528_p2, %p524_p13 }
 0x118   : > { %361 = vperm.xlu2 %503, %v358_v27  }
 0x15a   : > { %v235_v8 = vpop.permute.xlu2 %234 }
 0x15b   : > { %v237_v9 = vsel %vm230_vm2, %v235_v8, 0.0 }
 0x15c   : > { %238 = vst.msk [vmem:[#allocation2 + $0xc] sm:$0xf] %vm214_vm0, %v237_v9 }
 0x162   : > { %v246_v11 = vpop.permute.xlu2 %245 }
 0x163   : > { %v248_v12 = vsel %vm241_vm3, %v246_v11, 0.0  ;;  %v252_v21 = vld [vmem:[#allocation2 + $0x8] sm:$0xff] }
 0x164   : > { %249 = vst.msk [vmem:[#allocation2 + $0x10] sm:$0xf] %vm214_vm0, %v248_v12 }
 0x16a   : > { %v355_v30 = vpop.permute.xlu2 %354 }
 0x16b   : > { %v253_v22 = vld [vmem:[#allocation2 + $0x10] sm:$0xf] }
 0x172   : > { %v211_v15 = vpop.permute.xlu1 %210  ;;  %v362_v33 = vpop.permute.xlu2 %361 }
 0x173   : > { %v213_v16 = vsel %vm206_vm6, %v211_v15, 0.0 }
 0x174   : > { %215 = vst.msk [vmem:[#allocation2] sm:$0xf] %vm214_vm0, %v213_v16 }
 0x17a   : > { %v223_v18 = vpop.permute.xlu1 %222 }
 0x17b   : > { %v225_v19 = vsel %vm219_vm10, %v223_v18, 0.0 }
 0x17c   : > { %226 = vst.msk [vmem:[#allocation2 + $0x4] sm:$0xf] %vm214_vm0, %v225_v19 }
 0x183   : > { %v251_v20 = vld [vmem:[#allocation2] sm:$0xff] }
 0x184   : > { %254 = vxpose.xlu0.b32.start [1/3] (short) (narrow) %v251_v20, 16 }
 0x18c   : > { %255 = vxpose.xlu0.b32.cont [2/3] (short) (narrow) %v252_v21, 16 }
 0x194   : > { %256 = vxpose.xlu0.b32.end [3/3] (short) (narrow) %v253_v22, 16 }
 0x1fb   : > { %504 = vset.pattern.permute.xlu0 %v574_v26 }
 0x228   : > { %v270_v23 = vpop.trf.xlu0 }
 0x229   : > { %450 = vmatmul.msk.f32.vlgmr.msra.gmra.mxu0 %vm286_vm7, %v270_v23 }
 0x230   : > { %v271_v24 = vpop.trf.xlu0 }
 0x231   : > { %451 = vmatmul.msk.f32.vlgmr.msra.gmra.mxu1 %vm286_vm7, %v271_v24 }
 0x2a6   : > { %v313_v28 = vpop.f32.mrf.mxu0 }
 0x2a7   : > { %319 = vxpose.xlu1.b32.start [1/2] (short) (narrow) %v313_v28, 8 }
 0x2ae   : > { %v316_v29 = vpop.f32.mrf.mxu1 }
 0x2af   : > { %320 = vxpose.xlu1.b32.end [2/2] (short) (narrow) %v316_v29, 8 }
 0x34b   : > { %v335_v31 = vpop.trf.xlu1 }
 0x34c   : > { %v357_v32 = vmul.f32 %v355_v30, %v335_v31 }
 0x34e   : > { %v364_v34 = vadd.f32 %v362_v33, %v357_v32 }
 0x350   : > { %v365_v35 = vmax.f32 %v364_v34, 0.0 }
 0x352   : > { %367 = vst.msk [vmem:[%s188_s6] sm:$0xff] %vm366_vm11, %v365_v35 }
 0x353   : > { %532 = shalt.err (!%p529_p3)
}
 0x354   : > { %457 = dma.vmem_to_hbm [thread:$0]  (%p638_p5), %s382_s7, 128, %s384_s8, %s369_s9  }
 0x355 PF: > { %p463_p4 = scmp.ge.s32.totalorder %s567_s18, 2  ;;  %s395_s22 = sand.u32 1, %s555_s15  }
 0x356   : > { %s396_s23 = scalar_lea.sflag [#allocation4], %s395_s22 }
 0x357   : > { %p460_p7 = pnand %p463_p4, %p642_p6 }
 0x359   : > { %p461_p8 = pneg %p460_p7 }
 0x35b   : > { %550 = dma.done.wait (%p461_p8), %s396_s23, 128  }
 0x35c   : > { %552 = vsyncadd (%p461_p8), %s396_s23, 4294967168  ;;  %p14_p9 = scmp.ge.s32.totalorder %s625_s21, 4   ;;  %s710_s15 = smov %s559_s16 }
 0x35d   : > { %s711_s16 = smov %s563_s17  ;;  %s712_s17 = smov %s636_s24 }
 0x35e   : > { %s713_s18 = smov %s625_s21  ;;  %16 = sbr.rel (!%p14_p9) target bundleno = 3 (0x3), region = 71 }
 0x363   :  { %402 = vsyncpa [#allocation4], 1 }
 0x364   :  { %404 = vsyncpa [#allocation4 + $0x1], 1 }

</bundles_post_ra>
